<compile_context>
chip_gen: v6e
topology: v6e:2x2x1
jax: 0.10.0
libtpu: 0.0.40
codegen_flags: <defaults>
</compile_context>

<pallas_src>
import jax
import jax.numpy as jnp
from jax.experimental import pallas as pl
from jax.experimental.pallas import tpu as pltpu

LANE = 128        # TPU lane width (hidden-dim padding target)
SUBLANE = 8       # vreg sublane height (batch-tile granularity)
NEG_SLOPE = 0.01  # F.leaky_relu default negative_slope


def _leaky_relu(x):
    return jnp.where(x > 0, x, NEG_SLOPE * x)


def _round_up(x, m):
    return (x + m - 1) // m * m


def _pad2(a, rows, cols):
    r, c = a.shape
    return jnp.pad(a, ((0, rows - r), (0, cols - c)))


# ----------------------------------------------------------------------------
# Kernel
# ----------------------------------------------------------------------------
def critic_kernel(s_ref, a_ref, w_as_ref, w_aa_ref, b_a_ref,
                  w_h1_ref, b_h1_ref, s2_ref, w_o_ref, b_o_ref, o_ref):
    hid = w_h1_ref.shape[0]  # 128 (padded hidden width)

    # merged fc_in || fc_skip: one 256-wide MXU dot on the state rows ...
    y = jnp.dot(s_ref[...], w_as_ref[...], preferred_element_type=jnp.float32)
    # ... plus the action contribution (rank-1 VPU update when n_a == 1)
    if a_ref.shape[-1] == 1:
        y = y + a_ref[...] * w_aa_ref[...]
    else:
        y = y + jnp.dot(a_ref[...], w_aa_ref[...],
                        preferred_element_type=jnp.float32)
    y = y + b_a_ref[...]

    h1 = y[:, :hid]          # fc_in pre-activation
    x_skip = y[:, hid:]      # fc_skip output

    # fc_h1 with bn1 folded into (w_h1', b_h1')
    z1 = _leaky_relu(h1)
    h2 = jnp.dot(z1, w_h1_ref[...], preferred_element_type=jnp.float32) + b_h1_ref[...]

    # bn2: shift t2 is folded into b_o'; only the per-feature scale remains (VPU)
    z2 = _leaky_relu(h2)
    x3 = x_skip + z2 * s2_ref[...]

    # output head (bn2 shift + t2@W_o already folded into b_o')
    o_ref[...] = jnp.dot(x3, w_o_ref[...],
                         preferred_element_type=jnp.float32) + b_o_ref[...]


# ----------------------------------------------------------------------------
# Wrapper
# ----------------------------------------------------------------------------
def _choose_tiling(B):
    """Pick (B_pad, tile_rows, grid_steps)."""
    if B <= LANE:
        # Hot inference path: one full-extent block, no batch padding, 1 step.
        return B, B, 1
    B8 = _round_up(B, SUBLANE)
    # >= 2 grid steps (so 'parallel' uses both TensorCores on v7x), <= 256 rows/tile.
    tb = min(2 * LANE, _round_up((B8 + 1) // 2, SUBLANE))
    B_pad = _round_up(B8, tb)
    return B_pad, tb, B_pad // tb


def critic_apply(state, action, kp, n_o=1):
    state = state.astype(jnp.float32)
    action = action.astype(jnp.float32)
    B, n_s = state.shape
    n_a = action.shape[1]

    B_pad, tb, steps = _choose_tiling(B)
    if B_pad != B:  # only on the large-batch path; never for B <= 128
        state = jnp.pad(state, ((0, B_pad - B), (0, 0)))
        action = jnp.pad(action, ((0, B_pad - B), (0, 0)))

    vmem = pltpu.MemorySpace.VMEM

    def row(d):
        return pl.BlockSpec((tb, d), lambda i: (i, 0), memory_space=vmem)

    def full(arr):
        return pl.BlockSpec(arr.shape, lambda i: (0, 0), memory_space=vmem)

    out = pl.pallas_call(
        critic_kernel,
        out_shape=jax.ShapeDtypeStruct((B_pad, n_o), jnp.float32),
        grid=(steps,),
        in_specs=[row(n_s), row(n_a),
                  full(kp["w_as"]), full(kp["w_aa"]), full(kp["b_a"]),
                  full(kp["w_h1"]), full(kp["b_h1"]), full(kp["s2"]),
                  full(kp["w_o"]), full(kp["b_o"])],
        out_specs=row(n_o),
        compiler_params=pltpu.CompilerParams(
            dimension_semantics=("parallel",)),
    )(state, action, kp["w_as"], kp["w_aa"], kp["b_a"],
      kp["w_h1"], kp["b_h1"], kp["s2"], kp["w_o"], kp["b_o"])

    return out if B_pad == B else out[:B]


def critic_forward(xa, kp, n_o=1):
    """Module-style entry point: xa == [state, action]."""
    assert len(xa) == 2, "fused kernel expects xa == [state, action]"
    return critic_apply(xa[0], xa[1], kp, n_o=n_o)


# ----------------------------------------------------------------------------
# Parameters
# ----------------------------------------------------------------------------
def init_params(key, n_s=33, n_a=1, n_h=36, n_o=1, init_w=0.003, eps=1e-5):
    """Deterministic params matching the PyTorch module's init:
    weights ~ U(-init_w, init_w) (Critic.init_weights); biases keep nn.Linear's
    default U(-1/sqrt(fan_in), 1/sqrt(fan_in)); BatchNorm1d eval-mode defaults."""
    n_in = n_s + n_a
    ks = jax.random.split(key, 8)

    def lin(kw, kb, fan_in, fan_out):
        w = jax.random.uniform(kw, (fan_in, fan_out), jnp.float32, -init_w, init_w)
        lim = 1.0 / (fan_in ** 0.5)
        b = jax.random.uniform(kb, (1, fan_out), jnp.float32, -lim, lim)
        return w, b

    w_in, b_in = lin(ks[0], ks[1], n_in, n_h)
    w_h1, b_h1 = lin(ks[2], ks[3], n_h, n_h)
    w_skip, b_skip = lin(ks[4], ks[5], n_in, n_h)
    w_o, b_o = lin(ks[6], ks[7], n_h, n_o)

    # BatchNorm1d (eval): gamma=1, beta=0, running_mean=0, running_var=1
    gamma = jnp.ones((1, n_h), jnp.float32)
    beta = jnp.zeros((1, n_h), jnp.float32)
    mean = jnp.zeros((1, n_h), jnp.float32)
    var = jnp.ones((1, n_h), jnp.float32)
    s1 = gamma / jnp.sqrt(var + eps)
    t1 = beta - mean * s1
    s2 = gamma / jnp.sqrt(var + eps)
    t2 = beta - mean * s2

    return dict(w_in=w_in, b_in=b_in, w_h1=w_h1, b_h1=b_h1,
                w_skip=w_skip, b_skip=b_skip, w_o=w_o, b_o=b_o,
                s1=s1, t1=t1, s2=s2, t2=t2)


def fold_params(p, n_s=33, n_a=1):
    """One-time prep (off the hot path): fold eval-mode BN into the weights,
    merge fc_in||fc_skip into one 256-wide block split into state/action rows,
    and zero-pad hidden dims to 128 lanes (padding is exact: padded lanes stay 0)."""
    n_h = p["w_h1"].shape[0]
    n_o = p["w_o"].shape[1]

    # bn1 folded into fc_h1:  x1 @ W_h1 + b_h1  ==  lrelu(h1) @ W_h1' + b_h1'
    w_h1f = p["s1"].reshape(n_h, 1) * p["w_h1"]
    b_h1f = p["b_h1"] + p["t1"] @ p["w_h1"]
    # bn2 shift folded into fc_o's bias:  b_o' = b_o + t2 @ W_o
    b_of = p["b_o"] + p["t2"] @ p["w_o"]

    # merged fc_in || fc_skip, each half padded to 128 output lanes
    w_in_p = _pad2(p["w_in"], n_s + n_a, LANE)
    w_skip_p = _pad2(p["w_skip"], n_s + n_a, LANE)
    w_a = jnp.concatenate([w_in_p, w_skip_p], axis=1)        # [n_in, 256]
    b_a = jnp.concatenate([_pad2(p["b_in"], 1, LANE),
                           _pad2(p["b_skip"], 1, LANE)], axis=1)  # [1, 256]

    return dict(
        w_as=w_a[:n_s],                       # [n_s, 256] state rows (MXU dot)
        w_aa=w_a[n_s:],                       # [n_a, 256] action rows (VPU rank-1)
        b_a=b_a,                              # [1, 256]
        w_h1=_pad2(w_h1f, LANE, LANE),        # [128, 128] bn1-folded
        b_h1=_pad2(b_h1f, 1, LANE),           # [1, 128]
        s2=_pad2(p["s2"], 1, LANE),           # [1, 128] remaining bn2 scale
        w_o=_pad2(p["w_o"], LANE, n_o),       # [128, n_o]
        b_o=b_of,                             # [1, n_o] (bn2 shift folded)
    )


def critic_reference(xa, p):
    """Pure-JAX reference mirroring the PyTorch forward (eval-mode BN)."""
    x = jnp.concatenate(xa, axis=-1)
    x_skip = x @ p["w_skip"] + p["b_skip"]
    x1 = _leaky_relu(x @ p["w_in"] + p["b_in"]) * p["s1"] + p["t1"]
    x2 = _leaky_relu(x1 @ p["w_h1"] + p["b_h1"]) * p["s2"] + p["t2"]
    return (x_skip + x2) @ p["w_o"] + p["b_o"]


# ----------------------------------------------------------------------------
if __name__ == "__main__":
    n_s, n_a, n_h, n_o = 33, 1, 36, 1

    key = jax.random.PRNGKey(0)
    k_s, k_a, k_p, k_big = jax.random.split(key, 4)
    params = init_params(k_p, n_s, n_a, n_h, n_o)
    kp = fold_params(params, n_s=n_s, n_a=n_a)

    # Small per-step call (typical usage): no concat/pad/slice around the kernel.
    B = 2
    state = jax.random.normal(k_s, (B, n_s), jnp.float32)
    action = jax.random.normal(k_a, (B, n_a), jnp.float32)
    out = critic_forward([state, action], kp, n_o=n_o)
    jax.block_until_ready(out)
    ref = critic_reference([state, action], params)
    assert out.shape == (B, n_o)
    assert jnp.allclose(out, ref, atol=1e-5, rtol=1e-5)

    # Larger batched call: exercises the >=2-step "parallel" grid (dual-TC on v7x).
    B2 = 256
    state2 = jax.random.normal(k_big, (B2, n_s), jnp.float32)
    action2 = jax.random.normal(jax.random.fold_in(k_big, 1), (B2, n_a), jnp.float32)
    out2 = critic_forward([state2, action2], kp, n_o=n_o)
    jax.block_until_ready(out2)
    ref2 = critic_reference([state2, action2], params)
    assert out2.shape == (B2, n_o)
    assert jnp.allclose(out2, ref2, atol=1e-4, rtol=1e-4)

    print("KERNEL_OK")
</pallas_src>

<mosaic_0001>
module attributes {stable_mosaic.version = 11 : i64} {
  func.func @critic_kernel(%arg0: i32, %arg1: memref<2x33xf32, #tpu.memory_space<vmem>>, %arg2: memref<2x1xf32, #tpu.memory_space<vmem>>, %arg3: memref<33x256xf32, #tpu.memory_space<vmem>>, %arg4: memref<1x256xf32, #tpu.memory_space<vmem>>, %arg5: memref<1x256xf32, #tpu.memory_space<vmem>>, %arg6: memref<128x128xf32, #tpu.memory_space<vmem>>, %arg7: memref<1x128xf32, #tpu.memory_space<vmem>>, %arg8: memref<1x128xf32, #tpu.memory_space<vmem>>, %arg9: memref<128x1xf32, #tpu.memory_space<vmem>>, %arg10: memref<1x1xf32, #tpu.memory_space<vmem>>, %arg11: memref<2x1xf32, #tpu.memory_space<vmem>>) attributes {dimension_semantics = [#tpu.dimension_semantics<parallel>], iteration_bounds = array<i64: 1>, scalar_prefetch = 0 : i64, scratch_operands = 0 : i64, tpu.core_type = #tpu.core_type<tc>, window_params = [{transform_indices = @transform_0, window_bounds = array<i64: 2, 33>}, {transform_indices = @transform_1, window_bounds = array<i64: 2, 1>}, {pipeline_mode = #tpu.pipeline_mode<synchronous>, transform_indices = @transform_2, window_bounds = array<i64: 33, 256>}, {pipeline_mode = #tpu.pipeline_mode<synchronous>, transform_indices = @transform_3, window_bounds = array<i64: 1, 256>}, {pipeline_mode = #tpu.pipeline_mode<synchronous>, transform_indices = @transform_4, window_bounds = array<i64: 1, 256>}, {pipeline_mode = #tpu.pipeline_mode<synchronous>, transform_indices = @transform_5, window_bounds = array<i64: 128, 128>}, {pipeline_mode = #tpu.pipeline_mode<synchronous>, transform_indices = @transform_6, window_bounds = array<i64: 1, 128>}, {pipeline_mode = #tpu.pipeline_mode<synchronous>, transform_indices = @transform_7, window_bounds = array<i64: 1, 128>}, {pipeline_mode = #tpu.pipeline_mode<synchronous>, transform_indices = @transform_8, window_bounds = array<i64: 128, 1>}, {pipeline_mode = #tpu.pipeline_mode<synchronous>, transform_indices = @transform_9, window_bounds = array<i64: 1, 1>}, {transform_indices = @transform_10, window_bounds = array<i64: 2, 1>}]} {
    %c0 = arith.constant 0 : index
    %c0_0 = arith.constant 0 : index
    %0 = vector.load %arg1[%c0, %c0_0] : memref<2x33xf32, #tpu.memory_space<vmem>>, vector<2x33xf32>
    %c0_1 = arith.constant 0 : index
    %c0_2 = arith.constant 0 : index
    %1 = vector.load %arg3[%c0_1, %c0_2] : memref<33x256xf32, #tpu.memory_space<vmem>>, vector<33x256xf32>
    %cst = arith.constant dense<0.000000e+00> : vector<2x256xf32>
    %2 = tpu.matmul %0, %1, %cst {dimension_numbers = #tpu.dot_dimension_numbers<[1], [0], [0], [1], [0, 0, 1, 1], [], []>} : vector<2x33xf32>, vector<33x256xf32>, vector<2x256xf32> -> vector<2x256xf32>
    %c0_3 = arith.constant 0 : index
    %c0_4 = arith.constant 0 : index
    %3 = vector.load %arg2[%c0_3, %c0_4] : memref<2x1xf32, #tpu.memory_space<vmem>>, vector<2x1xf32>
    %c0_5 = arith.constant 0 : index
    %c0_6 = arith.constant 0 : index
    %4 = vector.load %arg4[%c0_5, %c0_6] : memref<1x256xf32, #tpu.memory_space<vmem>>, vector<1x256xf32>
    %5 = vector.broadcast %3 : vector<2x1xf32> to vector<2x256xf32>
    %6 = vector.broadcast %4 : vector<1x256xf32> to vector<2x256xf32>
    %7 = arith.mulf %5, %6 : vector<2x256xf32>
    %8 = arith.addf %2, %7 : vector<2x256xf32>
    %c0_7 = arith.constant 0 : index
    %c0_8 = arith.constant 0 : index
    %9 = vector.load %arg5[%c0_7, %c0_8] : memref<1x256xf32, #tpu.memory_space<vmem>>, vector<1x256xf32>
    %10 = vector.broadcast %9 : vector<1x256xf32> to vector<2x256xf32>
    %11 = arith.addf %8, %10 : vector<2x256xf32>
    %12 = vector.extract_strided_slice %11 {offsets = [0, 0], sizes = [2, 128], strides = [1, 1]} : vector<2x256xf32> to vector<2x128xf32>
    %13 = vector.extract_strided_slice %11 {offsets = [0, 128], sizes = [2, 128], strides = [1, 1]} : vector<2x256xf32> to vector<2x128xf32>
    %cst_9 = arith.constant 0.000000e+00 : f32
    %14 = vector.broadcast %cst_9 : f32 to vector<2x128xf32>
    %15 = arith.cmpf ogt, %12, %14 : vector<2x128xf32>
    %cst_10 = arith.constant 0.00999999977 : f32
    %16 = vector.broadcast %cst_10 : f32 to vector<2x128xf32>
    %17 = arith.mulf %16, %12 : vector<2x128xf32>
    %18 = arith.select %15, %12, %17 : vector<2x128xi1>, vector<2x128xf32>
    %c0_11 = arith.constant 0 : index
    %c0_12 = arith.constant 0 : index
    %19 = vector.load %arg6[%c0_11, %c0_12] : memref<128x128xf32, #tpu.memory_space<vmem>>, vector<128x128xf32>
    %cst_13 = arith.constant dense<0.000000e+00> : vector<2x128xf32>
    %20 = tpu.matmul %18, %19, %cst_13 {dimension_numbers = #tpu.dot_dimension_numbers<[1], [0], [0], [1], [0, 0, 1, 1], [], []>} : vector<2x128xf32>, vector<128x128xf32>, vector<2x128xf32> -> vector<2x128xf32>
    %c0_14 = arith.constant 0 : index
    %c0_15 = arith.constant 0 : index
    %21 = vector.load %arg7[%c0_14, %c0_15] : memref<1x128xf32, #tpu.memory_space<vmem>>, vector<1x128xf32>
    %22 = vector.broadcast %21 : vector<1x128xf32> to vector<2x128xf32>
    %23 = arith.addf %20, %22 : vector<2x128xf32>
    %cst_16 = arith.constant 0.000000e+00 : f32
    %24 = vector.broadcast %cst_16 : f32 to vector<2x128xf32>
    %25 = arith.cmpf ogt, %23, %24 : vector<2x128xf32>
    %cst_17 = arith.constant 0.00999999977 : f32
    %26 = vector.broadcast %cst_17 : f32 to vector<2x128xf32>
    %27 = arith.mulf %26, %23 : vector<2x128xf32>
    %28 = arith.select %25, %23, %27 : vector<2x128xi1>, vector<2x128xf32>
    %c0_18 = arith.constant 0 : index
    %c0_19 = arith.constant 0 : index
    %29 = vector.load %arg8[%c0_18, %c0_19] : memref<1x128xf32, #tpu.memory_space<vmem>>, vector<1x128xf32>
    %30 = vector.broadcast %29 : vector<1x128xf32> to vector<2x128xf32>
    %31 = arith.mulf %28, %30 : vector<2x128xf32>
    %32 = arith.addf %13, %31 : vector<2x128xf32>
    %c0_20 = arith.constant 0 : index
    %c0_21 = arith.constant 0 : index
    %33 = vector.load %arg9[%c0_20, %c0_21] : memref<128x1xf32, #tpu.memory_space<vmem>>, vector<128x1xf32>
    %cst_22 = arith.constant dense<0.000000e+00> : vector<2x1xf32>
    %34 = tpu.matmul %32, %33, %cst_22 {dimension_numbers = #tpu.dot_dimension_numbers<[1], [0], [0], [1], [0, 0, 1, 1], [], []>} : vector<2x128xf32>, vector<128x1xf32>, vector<2x1xf32> -> vector<2x1xf32>
    %c0_23 = arith.constant 0 : index
    %c0_24 = arith.constant 0 : index
    %35 = vector.load %arg10[%c0_23, %c0_24] : memref<1x1xf32, #tpu.memory_space<vmem>>, vector<1x1xf32>
    %36 = vector.broadcast %35 : vector<1x1xf32> to vector<2x1xf32>
    %37 = arith.addf %34, %36 : vector<2x1xf32>
    %c0_25 = arith.constant 0 : index
    %c0_26 = arith.constant 0 : index
    %38 = vector.load %arg11[%c0_25, %c0_26] : memref<2x1xf32, #tpu.memory_space<vmem>>, vector<2x1xf32>
    tpu.vector_store %arg11[%c0_25, %c0_26], %37 {strides = array<i32>} : memref<2x1xf32, #tpu.memory_space<vmem>>, vector<2x1xf32>,
    return
  }
  func.func @transform_0(%arg0: i32) -> (i32, i32) {
    %c0_i32 = arith.constant 0 : i32
    %c0_i32_0 = arith.constant 0 : i32
    return %arg0, %c0_i32 : i32, i32
  }
  func.func @transform_1(%arg0: i32) -> (i32, i32) {
    %c0_i32 = arith.constant 0 : i32
    %c0_i32_0 = arith.constant 0 : i32
    return %arg0, %c0_i32 : i32, i32
  }
  func.func @transform_2(%arg0: i32) -> (i32, i32) {
    %c0_i32 = arith.constant 0 : i32
    %c0_i32_0 = arith.constant 0 : i32
    %c0_i32_1 = arith.constant 0 : i32
    return %c0_i32, %c0_i32_0 : i32, i32
  }
  func.func @transform_3(%arg0: i32) -> (i32, i32) {
    %c0_i32 = arith.constant 0 : i32
    %c0_i32_0 = arith.constant 0 : i32
    %c0_i32_1 = arith.constant 0 : i32
    return %c0_i32, %c0_i32_0 : i32, i32
  }
  func.func @transform_4(%arg0: i32) -> (i32, i32) {
    %c0_i32 = arith.constant 0 : i32
    %c0_i32_0 = arith.constant 0 : i32
    %c0_i32_1 = arith.constant 0 : i32
    return %c0_i32, %c0_i32_0 : i32, i32
  }
  func.func @transform_5(%arg0: i32) -> (i32, i32) {
    %c0_i32 = arith.constant 0 : i32
    %c0_i32_0 = arith.constant 0 : i32
    %c0_i32_1 = arith.constant 0 : i32
    return %c0_i32, %c0_i32_0 : i32, i32
  }
  func.func @transform_6(%arg0: i32) -> (i32, i32) {
    %c0_i32 = arith.constant 0 : i32
    %c0_i32_0 = arith.constant 0 : i32
    %c0_i32_1 = arith.constant 0 : i32
    return %c0_i32, %c0_i32_0 : i32, i32
  }
  func.func @transform_7(%arg0: i32) -> (i32, i32) {
    %c0_i32 = arith.constant 0 : i32
    %c0_i32_0 = arith.constant 0 : i32
    %c0_i32_1 = arith.constant 0 : i32
    return %c0_i32, %c0_i32_0 : i32, i32
  }
  func.func @transform_8(%arg0: i32) -> (i32, i32) {
    %c0_i32 = arith.constant 0 : i32
    %c0_i32_0 = arith.constant 0 : i32
    %c0_i32_1 = arith.constant 0 : i32
    return %c0_i32, %c0_i32_0 : i32, i32
  }
  func.func @transform_9(%arg0: i32) -> (i32, i32) {
    %c0_i32 = arith.constant 0 : i32
    %c0_i32_0 = arith.constant 0 : i32
    %c0_i32_1 = arith.constant 0 : i32
    return %c0_i32, %c0_i32_0 : i32, i32
  }
  func.func @transform_10(%arg0: i32) -> (i32, i32) {
    %c0_i32 = arith.constant 0 : i32
    %c0_i32_0 = arith.constant 0 : i32
    return %arg0, %c0_i32 : i32, i32
  }
}

</mosaic_0001>

<bundles_post_ra>
// kernel: tpu_custom_call.1
= control target key start
LH: loop header
LB: loop body
LE: loop exit
PB: predicated region body
PF: predicated region fallthrough
CT: control target
= control target key end

     0   :  { %s755_s0 = inlined_call_operand.vmem [shape: f32[2,33], index: 0, kind: input, shape index: {}]   ;;  %s756_s1 = inlined_call_operand.vmem [shape: f32[2,1], index: 1, kind: input, shape index: {}]   ;;  %s757_s2 = inlined_call_operand.hbm [shape: f32[33,256], index: 2, kind: input, shape index: {}]   ;;  %s758_s3 = inlined_call_operand.vmem [shape: f32[1,256], index: 3, kind: input, shape index: {}]   ;;  %s759_s4 = inlined_call_operand.vmem [shape: f32[1,256], index: 4, kind: input, shape index: {}]   ;;  %s760_s5 = inlined_call_operand.vmem [shape: f32[128,128], index: 5, kind: input, shape index: {}]   ;;  %s761_s6 = inlined_call_operand.vmem [shape: f32[1,128], index: 6, kind: input, shape index: {}]   ;;  %s762_s7 = inlined_call_operand.vmem [shape: f32[1,128], index: 7, kind: input, shape index: {}]   ;;  %s763_s8 = inlined_call_operand.vmem [shape: f32[128,1], index: 8, kind: input, shape index: {}]   ;;  %s764_s9 = inlined_call_operand.<no memory space> [shape: f32[1,1], index: 9, kind: input, shape index: {}]   ;;  %s765_s10 = inlined_call_operand.vmem [shape: f32[2,1], index: 10, kind: output, shape index: {}]  }
   0x1   :  { %v15_v0 = vstv %s764_s9 }
   0x2   :  { %16 = vst [vmem:[#allocation2] sm:$0x1] %v15_v0 }
   0x3   :  { %17 = vsyncpa [#allocation4], 0  ;;  %s525_s15 = smov [#allocation3]  }
   0x4   :  { %s27_s16 = sshll.u32 %s525_s15, 4  ;;  %s28_s16 = int_to_ptr.vmem [resolvable:$true] %s27_s16 }
   0x5   :  { %s511_s17 = scalar_lea.vmem %s28_s16, 1280  ;;  %p516_p1 = scmp.lt.s32.totalorder %s28_s16, %s28_s16 }
   0x6   :  { %p512_p0 = scmp.ne.s32.totalorder %s28_s16, %s511_s17  ;;  %p517_p2 = scmp.lt.s32.totalorder %s511_s17, %s511_s17 }
   0x8   :  { %p518_p3 = por %p517_p2, %p516_p1 }
   0xa   :  { %p519_p4 = pnand %p518_p3, %p512_p0 }
   0xc   :  { %522 = shalt.err (!%p519_p4)
}
   0xd   :  { %s526_s18 = smov 256   ;;  %s527_s19 = smov 16  }
   0xe   :  { %33 = dma.hbm_to_vmem [thread:$0]  %s757_s2, 1280, %s28_s16, [#allocation4], %s526_s18, %s526_s18, %s527_s19  }
   0xf   :  { %523 = dma.done.wait [#allocation4], 1280  }
  0x10   :  { %524 = vsyncadd [#allocation4], 4294966016  ;;  %v528_v1 = vmov 0.0   ;;  %v529_v2 = vmov 0   ;;  %v70_v3 = vlaneseq  ;;  %vm86_vm0 = vcmask 1040384   ;;  %v59_v6 = vld [vmem:[#allocation3 + $0x38] sm:$0xff] }
  0x11   :  { %157 = vmatprep.mubr.f32.mxu0 %v528_v1  ;;  %502 = vset.pattern.permute.xlu0 %v529_v2  ;;  %v61_v4 = vld [vmem:[#allocation3 + $0x48] sm:$0x1]  ;;  %v60_v5 = vld [vmem:[#allocation3 + $0x40] sm:$0x1]  ;;  %v58_v8 = vld [vmem:[#allocation3 + $0x30] sm:$0xff]  ;;  %vm82_vm1 = vcmask 269312  }
  0x12   :  { %426 = vmatprep.subr.mxu1 %v528_v1  ;;  %v594_v7 = vshrl.u32 %v70_v3, 7  ;;  %386 = vmatprep.subr.msk.mxu0 %vm86_vm0, %v61_v4  ;;  %v57_v9 = vld [vmem:[#allocation3 + $0x28] sm:$0xff]  ;;  %v56_v10 = vld [vmem:[#allocation3 + $0x20] sm:$0xff]  ;;  %v55_v12 = vld [vmem:[#allocation3 + $0x18] sm:$0xff]  ;;  %vm530_vm2 = vmmov 0   ;;  %vm379_vm5 = vcmask 1024  }
  0x13   :  { %387 = vmatpush1.msk.msra.mxu0 %vm86_vm0, %v60_v5  ;;  %v62_v11 = vld [vmem:[%s756_s1] sm:$0x3]  ;;  %v196_v13 = vld [vmem:[%s760_s5 + $0x78] sm:$0xff]  ;;  %v195_v14 = vld [vmem:[%s760_s5 + $0x70] sm:$0xff]  ;;  %458 = vmatprep.mubr.msk.f32.mxu1 %vm530_vm2, %v528_v1 }
  0x14   :  { %117 = vmatprep.subr.mxu0 %v59_v6  ;;  %66 = vperm.xlu0 %502, %v62_v11   ;;  %v76_v15 = vsub.s32 1, %v594_v7  ;;  %v54_v16 = vld [vmem:[#allocation3 + $0x10] sm:$0xff]  ;;  %v53_v17 = vld [vmem:[#allocation3 + $0x8] sm:$0xff]  ;;  %v52_v19 = vld [vmem:[#allocation3] sm:$0xff]  ;;  %v72_v51 = vsub.s32 0, %v594_v7 }
  0x15   :  { %118 = vmatpush1.msra.mxu0 %v58_v8  ;;  %427 = vmatpush3.msra.mxu1 %v196_v13  ;;  %v194_v18 = vld [vmem:[%s760_s5 + $0x68] sm:$0xff]  ;;  %v613_v20 = vld [vmem:[%s758_s3] sm:$0x3]  ;;  %v192_v24 = vld [vmem:[%s760_s5 + $0x58] sm:$0xff] }
  0x16   :  { %119 = vmatprep.subr.mxu0 %v57_v9  ;;  %428 = vmatprep.subr.mxu1 %v528_v1  ;;  %v51_v21 = vld [vmem:[%s755_s0] sm:$0x3]  ;;  %v623_v23 = vrot.slane %v613_v20, %v76_v15  ;;  %v191_v25 = vld [vmem:[%s760_s5 + $0x50] sm:$0xff]  ;;  %v190_v26 = vld [vmem:[%s760_s5 + $0x48] sm:$0xff]  ;;  %v73_v52 = vrot.slane %v613_v20, %v72_v51 }
  0x17   :  { %120 = vmatpush1.msra.mxu0 %v56_v10  ;;  %429 = vmatpush3.msra.mxu1 %v195_v14  ;;  %v193_v22 = vld [vmem:[%s760_s5 + $0x60] sm:$0xff]  ;;  %v188_v28 = vld [vmem:[%s760_s5 + $0x38] sm:$0xff]  ;;  %v187_v29 = vld [vmem:[%s760_s5 + $0x30] sm:$0xff] }
  0x18   :  { %121 = vmatprep.subr.mxu0 %v55_v12  ;;  %430 = vmatprep.subr.mxu1 %v528_v1  ;;  %v189_v27 = vld [vmem:[%s760_s5 + $0x40] sm:$0xff]  ;;  %v186_v30 = vld [vmem:[%s760_s5 + $0x28] sm:$0xff]  ;;  %v184_v32 = vld [vmem:[%s760_s5 + $0x18] sm:$0xff] }
  0x19   :  { %122 = vmatpush1.msra.mxu0 %v54_v16  ;;  %431 = vmatpush3.msra.mxu1 %v194_v18  ;;  %v185_v31 = vld [vmem:[%s760_s5 + $0x20] sm:$0xff]  ;;  %v183_v34 = vld [vmem:[%s760_s5 + $0x10] sm:$0xff]  ;;  %v182_v36 = vld [vmem:[%s760_s5 + $0x8] sm:$0xff] }
  0x1a   :  { %123 = vmatprep.subr.mxu0 %v53_v17  ;;  %432 = vmatprep.subr.mxu1 %v528_v1  ;;  %v164_v33 = vld [vmem:[%s759_s4] sm:$0x3]  ;;  %v301_v38 = vld [vmem:[%s763_s8 + $0x78] sm:$0xff]  ;;  %v300_v39 = vld [vmem:[%s763_s8 + $0x70] sm:$0xff] }
  0x1b   :  { %124 = vmatpush1.msra.mxu0 %v52_v19  ;;  %433 = vmatpush3.msra.mxu1 %v193_v22  ;;  %v173_v35 = vrot.slane %v164_v33, %v76_v15  ;;  %v181_v37 = vld [vmem:[%s760_s5] sm:$0xff]  ;;  %v299_v40 = vld [vmem:[%s763_s8 + $0x68] sm:$0xff]  ;;  %v297_v42 = vld [vmem:[%s763_s8 + $0x58] sm:$0xff]  ;;  %v169_v54 = vrot.slane %v164_v33, %v72_v51 }
  0x1c   :  { %388 = vmatmul.mubr.msk.f32.vlgmr.msra.gmra.mxu0 %vm82_vm1, %v51_v21  ;;  %434 = vmatprep.subr.mxu1 %v528_v1  ;;  %v298_v41 = vld [vmem:[%s763_s8 + $0x60] sm:$0xff]  ;;  %v296_v43 = vld [vmem:[%s763_s8 + $0x50] sm:$0xff]  ;;  %v295_v44 = vld [vmem:[%s763_s8 + $0x48] sm:$0xff] }
  0x1d   :  { %461 = vmatprep.subr.mxu0 %v528_v1  ;;  %435 = vmatpush3.msra.mxu1 %v192_v24  ;;  %v294_v45 = vld [vmem:[%s763_s8 + $0x40] sm:$0xff]  ;;  %v293_v46 = vld [vmem:[%s763_s8 + $0x38] sm:$0xff]  ;;  %v292_v47 = vld [vmem:[%s763_s8 + $0x30] sm:$0xff] }
  0x1e   :  { %436 = vmatprep.subr.mxu1 %v528_v1  ;;  %493 = vmatprep.mubr.msk.f32.mxu0 %vm530_vm2, %v528_v1  ;;  %v291_v48 = vld [vmem:[%s763_s8 + $0x28] sm:$0xff]  ;;  %v290_v63 = vld [vmem:[%s763_s8 + $0x20] sm:$0xff]  ;;  %v289_v0 = vld [vmem:[%s763_s8 + $0x18] sm:$0xff] }
  0x1f   :  { %437 = vmatpush3.msra.mxu1 %v191_v25  ;;  %462 = vmatpush3.msra.mxu0 %v301_v38  ;;  %v288_v2 = vld [vmem:[%s763_s8 + $0x10] sm:$0xff]  ;;  %v287_v3 = vld [vmem:[%s763_s8 + $0x8] sm:$0xff]  ;;  %v286_v4 = vld [vmem:[%s763_s8] sm:$0xff] }
  0x20   :  { %438 = vmatprep.subr.mxu1 %v528_v1  ;;  %463 = vmatprep.subr.mxu0 %v528_v1  ;;  %v389_v5 = vld [vmem:[%s761_s6] ss:$0 sm:$0xff] }
  0x21   :  { %439 = vmatpush3.msra.mxu1 %v190_v26  ;;  %464 = vmatpush3.msra.mxu0 %v300_v39  ;;  %v390_v10 = vld [vmem:[%s762_s7] ss:$0 sm:$0xff] }
  0x22   :  { %440 = vmatprep.subr.mxu1 %v528_v1  ;;  %465 = vmatprep.subr.mxu0 %v528_v1  ;;  %v391_v14 = vld [vmem:[#allocation2] ss:$0 sm:$0xff] }
  0x23   :  { %441 = vmatpush3.msra.mxu1 %v189_v27  ;;  %466 = vmatpush3.msra.mxu0 %v299_v40 }
  0x24   :  { %442 = vmatprep.subr.mxu1 %v528_v1  ;;  %467 = vmatprep.subr.mxu0 %v528_v1 }
  0x25   :  { %443 = vmatpush3.msra.mxu1 %v188_v28  ;;  %468 = vmatpush3.msra.mxu0 %v298_v41 }
  0x26   :  { %444 = vmatprep.subr.mxu1 %v528_v1  ;;  %469 = vmatprep.subr.mxu0 %v528_v1 }
  0x27   :  { %445 = vmatpush3.msra.mxu1 %v187_v29  ;;  %470 = vmatpush3.msra.mxu0 %v297_v42 }
  0x28   :  { %446 = vmatprep.subr.mxu1 %v528_v1  ;;  %471 = vmatprep.subr.mxu0 %v528_v1 }
  0x29   :  { %447 = vmatpush3.msra.mxu1 %v186_v30  ;;  %472 = vmatpush3.msra.mxu0 %v296_v43 }
  0x2a   :  { %448 = vmatprep.subr.mxu1 %v528_v1  ;;  %473 = vmatprep.subr.mxu0 %v528_v1 }
  0x2b   :  { %449 = vmatpush3.msra.mxu1 %v185_v31  ;;  %474 = vmatpush3.msra.mxu0 %v295_v44 }
  0x2c   :  { %450 = vmatprep.subr.mxu1 %v528_v1  ;;  %475 = vmatprep.subr.mxu0 %v528_v1 }
  0x2d   :  { %451 = vmatpush3.msra.mxu1 %v184_v32  ;;  %476 = vmatpush3.msra.mxu0 %v294_v45 }
  0x2e   :  { %452 = vmatprep.subr.mxu1 %v528_v1  ;;  %477 = vmatprep.subr.mxu0 %v528_v1 }
  0x2f   :  { %453 = vmatpush3.msra.mxu1 %v183_v34  ;;  %478 = vmatpush3.msra.mxu0 %v293_v46 }
  0x30   :  { %454 = vmatprep.subr.mxu1 %v528_v1  ;;  %479 = vmatprep.subr.mxu0 %v528_v1 }
  0x31   :  { %455 = vmatpush3.msra.mxu1 %v182_v36  ;;  %480 = vmatpush3.msra.mxu0 %v292_v47 }
  0x32   :  { %456 = vmatprep.subr.mxu1 %v528_v1  ;;  %481 = vmatprep.subr.mxu0 %v528_v1 }
  0x33   :  { %457 = vmatpush3.msra.mxu1 %v181_v37  ;;  %482 = vmatpush3.msra.mxu0 %v291_v48 }
  0x34   :  { %483 = vmatprep.subr.mxu0 %v528_v1 }
  0x35   :  { %484 = vmatpush3.msra.mxu0 %v290_v63 }
  0x36   :  { %485 = vmatprep.subr.mxu0 %v528_v1 }
  0x37   :  { %486 = vmatpush3.msra.mxu0 %v289_v0 }
  0x38   :  { %487 = vmatprep.subr.mxu0 %v528_v1 }
  0x39   :  { %488 = vmatpush3.msra.mxu0 %v288_v2 }
  0x3a   :  { %489 = vmatprep.subr.mxu0 %v528_v1 }
  0x3b   :  { %490 = vmatpush3.msra.mxu0 %v287_v3 }
  0x3c   :  { %491 = vmatprep.subr.mxu0 %v528_v1 }
  0x3d   :  { %492 = vmatpush3.msra.mxu0 %v286_v4 }
  0x8f   :  { %v67_v49 = vpop.permute.xlu0 %66 }
  0x90   :  { %v81_v50 = vmul.f32 %v623_v23, %v67_v49  ;;  %v80_v53 = vmul.f32 %v73_v52, %v67_v49 }
  0xdc   :  { %v159_v55 = vpop.f32.mrf.mxu0 }
  0xdd   :  { %v160_v56 = vadd.f32 %v159_v55, %v80_v53 }
  0xde   :  { %v161_v57 = vpop.f32.mrf.mxu0 }
  0xdf   :  { %v176_v58 = vadd.f32 %v169_v54, %v160_v56  ;;  %v162_v59 = vadd.f32 %v161_v57, %v81_v50 }
  0xe1   :  { %v177_v60 = vadd.f32 %v173_v35, %v162_v59  ;;  %vm178_vm3 = vcmp.gt.f32.partialorder %v176_v58, 0.0  ;;  %v179_v61 = vmul.f32 0.01, %v176_v58 }
  0xe3   :  { %v180_v62 = vsel %vm178_vm3, %v176_v58, %v179_v61 }
  0xe4   :  { %459 = vmatmul.mubr.f32.vlgmr.msra.gmra.mxu1 %v180_v62 }
 0x1a4   :  { %v270_v6 = vpop.f32.mrf.mxu1 }
 0x1a5   :  { %v271_v7 = vadd.f32 %v389_v5, %v270_v6 }
 0x1a6   :  { %v460_v8 = vpop.f32.mrf.mxu1 }
 0x1a7   :  { %vm274_vm4 = vcmp.gt.f32.partialorder %v271_v7, 0.0  ;;  %v275_v9 = vmul.f32 0.01, %v271_v7 }
 0x1a9   :  { %v276_v11 = vsel %vm274_vm4, %v271_v7, %v275_v9 }
 0x1aa   :  { %v284_v12 = vmul.f32 %v390_v10, %v276_v11 }
 0x1ac   :  { %v285_v13 = vadd.f32 %v284_v12, %v177_v60 }
 0x1ae   :  { %494 = vmatmul.mubr.f32.vlgmr.msra.gmra.mxu0 %v285_v13 }
 0x26e   :  { %v375_v1 = vpop.f32.mrf.mxu0 }
 0x26f   :  { %v376_v15 = vadd.f32 %v391_v14, %v375_v1 }
 0x270   :  { %v495_v16 = vpop.f32.mrf.mxu0 }
 0x271   :  { %380 = vst.msk [vmem:[%s765_s10] sm:$0x3] %vm379_vm5, %v376_v15 }
 0x272   :  { %385 = vsyncpa [#allocation4], 1 }

</bundles_post_ra>
